<compile_context>
chip_gen: v7x
topology: tpu7x:2x2x1
jax: 0.10.0
libtpu: 0.0.40
codegen_flags: <defaults>
</compile_context>

<pallas_src>
import functools

import jax
import jax.numpy as jnp
from jax.experimental import pallas as pl
from jax.experimental.pallas import tpu as pltpu


def _router_topk_kernel(x_ref, w_ref, *out_refs, top_k, num_experts, with_logits):
    # x_ref:  (tt, H)       token tile (native dtype)
    # w_ref:  (H,  E_pad)   router weight, zero-padded to a lane multiple
    # outs:   [logits (tt, E)]?, affinities (tt, E), indices (tt, K)
    if with_logits:
        logits_ref, aff_ref, idx_ref = out_refs
    else:
        aff_ref, idx_ref = out_refs

    # ---- router linear (MXU, native-dtype operands, f32 accumulation) ----
    logits_full = jnp.dot(x_ref[...], w_ref[...],
                          preferred_element_type=jnp.float32)
    tt, e_pad = logits_full.shape
    # Drop the zero-padded expert columns once (static lane slice); no
    # iota/compare/select masking is needed downstream.
    logits = logits_full[:, :num_experts] if num_experts != e_pad else logits_full

    if with_logits:
        logits_ref[...] = logits.astype(logits_ref.dtype)

    # ---- softmax over experts (f32; torch uses f64 but TPU has no f64) ----
    m = jnp.max(logits, axis=-1, keepdims=True)
    e = jnp.exp(logits - m)
    denom = jnp.sum(e, axis=-1, keepdims=True)
    aff_ref[...] = (e / denom).astype(aff_ref.dtype)   # exact divide

    # ---- top-k: one cross-lane max per k on packed int32 keys ----
    # Monotonic float->int encoding preserves ordering; the low idx_bits hold
    # (E-1-col) so exact ties resolve to the lowest index within the same
    # single max reduction.
    col = jax.lax.broadcasted_iota(jnp.int32, (tt, num_experts), 1)
    bits = pltpu.bitcast(logits, jnp.int32)
    key = jnp.where(bits < 0, bits ^ jnp.int32(0x7FFFFFFF), bits)
    idx_bits = max(1, (num_experts - 1).bit_length())
    low_mask = jnp.int32((1 << idx_bits) - 1)
    high_mask = jnp.int32(~((1 << idx_bits) - 1))
    packed = (key & high_mask) | (jnp.int32(num_experts - 1) - col)
    int_min = jnp.int32(jnp.iinfo(jnp.int32).min)

    for k in range(top_k):
        pmax = jnp.max(packed, axis=-1, keepdims=True)        # (tt, 1)
        idx = jnp.int32(num_experts - 1) - (pmax & low_mask)  # (tt, 1), 2-D
        idx_ref[:, k:k + 1] = idx
        if k + 1 < top_k:
            packed = jnp.where(col == idx, int_min, packed)


def router_topk_forward(hidden_states, router_weight, top_k, *,
                        token_tile=None, return_logits=True):
    """hidden_states: (S, B, H); router_weight: (H, E) (transpose of torch's).

    Returns (router_logits (T, E) or None, expert_affinities (T, E),
             expert_index (T, top_k) int32) with T = S * B.
    """
    S, B, H = hidden_states.shape
    Hw, E = router_weight.shape
    assert Hw == H
    assert 0 < top_k <= E
    T = S * B
    dtype = hidden_states.dtype
    itemsize = jnp.dtype(dtype).itemsize
    n_eout = 2 if return_logits else 1
    x = hidden_states.reshape(T, H)

    # Pad only the (small) router weight so the MXU N dim is a lane multiple.
    # Activations and outputs are NOT padded (no extra HBM passes).
    E_pad = ((E + 127) // 128) * 128
    if E_pad != E:
        router_weight = jnp.pad(router_weight, ((0, 0), (0, E_pad - E)))

    # ---- generation-aware token tile: keep x double-buffer + weight +
    # output buffers inside a fraction of this chip's VMEM.
    try:
        vmem_cap = int(pltpu.get_tpu_info().vmem_capacity_bytes)
    except Exception:          # conservative default (v7x: 64 MiB per core)
        vmem_cap = 64 << 20
    weight_bytes = H * E_pad * itemsize
    per_token = (2 * H * itemsize                 # x (double-buffered)
                 + 2 * E * itemsize * n_eout      # affinities (+ logits)
                 + 2 * top_k * 4)                 # indices
    budget = max(4 << 20, int(0.4 * vmem_cap) - weight_bytes)
    if token_tile is None:
        token_tile = 1024 if vmem_cap >= (96 << 20) else 512
    tt = min(int(token_tile), budget // per_token)
    tt = max(16, (tt // 16) * 16)        # sublane-aligned for f32 and bf16
    if T <= tt:
        tt = T                           # single step; block == full extent
    grid = (pl.cdiv(T, tt),)             # ragged last tile handled by Pallas
    # TODO(synk): on v7x (2 TensorCores) nudge tt so the grid length is a
    #             multiple of 2 when T is small, to keep both cores busy.

    kernel = functools.partial(_router_topk_kernel, top_k=top_k,
                               num_experts=E, with_logits=return_logits)

    in_specs = [
        pl.BlockSpec((tt, H), lambda i: (i, 0)),
        # Constant block index across the grid -> single-buffer the weight.
        pl.BlockSpec((H, E_pad), lambda i: (0, 0),
                     pipeline_mode=pl.Buffered(1)),
    ]

    out_shape, out_specs = [], []
    if return_logits:
        out_shape.append(jax.ShapeDtypeStruct((T, E), dtype))
        out_specs.append(pl.BlockSpec((tt, E), lambda i: (i, 0)))
    out_shape.append(jax.ShapeDtypeStruct((T, E), dtype))
    out_specs.append(pl.BlockSpec((tt, E), lambda i: (i, 0)))
    out_shape.append(jax.ShapeDtypeStruct((T, top_k), jnp.int32))
    out_specs.append(pl.BlockSpec((tt, top_k), lambda i: (i, 0)))

    vmem_needed = (2 * tt * H * itemsize + weight_bytes
                   + 2 * tt * E * itemsize * n_eout + 2 * tt * top_k * 4
                   + 2 * tt * E_pad * 4)          # f32 in-kernel intermediates
    vmem_limit = max(16 << 20, int(1.3 * vmem_needed) + (4 << 20))
    vmem_limit = min(vmem_limit, vmem_cap - (16 << 20))   # compiler headroom

    cost = pl.CostEstimate(
        flops=2 * T * H * E_pad,
        transcendentals=T * E,
        bytes_accessed=int(T * H * itemsize + weight_bytes
                           + T * E * itemsize * n_eout + T * top_k * 4),
    )

    outs = pl.pallas_call(
        kernel,
        out_shape=tuple(out_shape),
        grid_spec=pltpu.PrefetchScalarGridSpec(
            num_scalar_prefetch=0,
            grid=grid,
            in_specs=in_specs,
            out_specs=out_specs,
        ),
        compiler_params=pltpu.CompilerParams(
            dimension_semantics=("parallel",),
            vmem_limit_bytes=vmem_limit),
        cost_estimate=cost,
    )(x, router_weight)

    if return_logits:
        logits, affinities, expert_index = outs
    else:
        affinities, expert_index = outs
        logits = None
    return logits, affinities, expert_index


if __name__ == "__main__":
    # Small config: S=16, B=8, H=32, E=8 experts, top_k=2  (T=128 tokens).
    S, B, H, E, TOP_K = 16, 8, 32, 8, 2
    key = jax.random.PRNGKey(0)
    k_x, k_w = jax.random.split(key)

    hidden_states = jax.random.normal(k_x, (S, B, H), dtype=jnp.float32)
    # torch.nn.Linear init: U(-1/sqrt(H), 1/sqrt(H)); stored here as (H, E).
    bound = 1.0 / (H ** 0.5)
    router_weight = jax.random.uniform(
        k_w, (H, E), dtype=jnp.float32, minval=-bound, maxval=bound)

    # token_tile=64 -> grid of 2 steps even at this tiny demo size.
    logits, affinities, expert_index = router_topk_forward(
        hidden_states, router_weight, TOP_K, token_tile=64)
    jax.block_until_ready((logits, affinities, expert_index))

    # Lightweight sanity check against a plain-JAX reference.
    x_flat = hidden_states.reshape(-1, H)
    ref_logits = x_flat @ router_weight
    ref_aff = jax.nn.softmax(ref_logits.astype(jnp.float32), axis=-1)
    ref_aff = ref_aff.astype(hidden_states.dtype)
    ref_vals, _ = jax.lax.top_k(ref_logits, TOP_K)

    assert logits.shape == (S * B, E)
    assert affinities.shape == (S * B, E)
    assert expert_index.shape == (S * B, TOP_K)
    assert jnp.allclose(logits, ref_logits, atol=1e-5, rtol=1e-5)
    assert jnp.allclose(affinities, ref_aff, atol=1e-4, rtol=1e-4)
    # Tie-robust top-k check: the logits of the chosen experts match the
    # reference top-k values position-wise (index order for exact ties is
    # unspecified in torch.topk as well).
    picked = jnp.take_along_axis(ref_logits, expert_index, axis=-1)
    assert jnp.allclose(picked, ref_vals, atol=1e-5, rtol=1e-5)
    assert jnp.all((expert_index >= 0) & (expert_index < E))

    print("KERNEL_OK")
</pallas_src>

<mosaic_0001>
module attributes {stable_mosaic.version = 11 : i64} {
  func.func @_router_topk_kernel(%arg0: i32, %arg1: memref<64x32xf32, #tpu.memory_space<vmem>>, %arg2: memref<32x128xf32, #tpu.memory_space<vmem>>, %arg3: memref<64x8xf32, #tpu.memory_space<vmem>>, %arg4: memref<64x8xf32, #tpu.memory_space<vmem>>, %arg5: memref<64x2xi32, #tpu.memory_space<vmem>>) attributes {dimension_semantics = [#tpu.dimension_semantics<parallel>], iteration_bounds = array<i64: 2>, scalar_prefetch = 0 : i64, scratch_operands = 0 : i64, tpu.core_type = #tpu.core_type<tc>, window_params = [{transform_indices = @transform_0, window_bounds = array<i64: 64, 32>}, {pipeline_mode = #tpu.pipeline_mode<synchronous>, transform_indices = @transform_1, window_bounds = array<i64: 32, 128>}, {transform_indices = @transform_2, window_bounds = array<i64: 64, 8>}, {transform_indices = @transform_3, window_bounds = array<i64: 64, 8>}, {transform_indices = @transform_4, window_bounds = array<i64: 64, 2>}]} {
    %c0 = arith.constant 0 : index
    %c0_0 = arith.constant 0 : index
    %0 = vector.load %arg1[%c0, %c0_0] : memref<64x32xf32, #tpu.memory_space<vmem>>, vector<64x32xf32>
    %c0_1 = arith.constant 0 : index
    %c0_2 = arith.constant 0 : index
    %1 = vector.load %arg2[%c0_1, %c0_2] : memref<32x128xf32, #tpu.memory_space<vmem>>, vector<32x128xf32>
    %cst = arith.constant dense<0.000000e+00> : vector<64x128xf32>
    %2 = tpu.matmul %0, %1, %cst {dimension_numbers = #tpu.dot_dimension_numbers<[1], [0], [0], [1], [0, 0, 1, 1], [], []>} : vector<64x32xf32>, vector<32x128xf32>, vector<64x128xf32> -> vector<64x128xf32>
    %3 = vector.extract_strided_slice %2 {offsets = [0, 0], sizes = [64, 8], strides = [1, 1]} : vector<64x128xf32> to vector<64x8xf32>
    %c0_3 = arith.constant 0 : index
    %c0_4 = arith.constant 0 : index
    %4 = vector.load %arg3[%c0_3, %c0_4] : memref<64x8xf32, #tpu.memory_space<vmem>>, vector<64x8xf32>
    tpu.vector_store %arg3[%c0_3, %c0_4], %3 {strides = array<i32>} : memref<64x8xf32, #tpu.memory_space<vmem>>, vector<64x8xf32>,
    %cst_5 = arith.constant dense<0xFF800000> : vector<64xf32>
    %5 = vector.multi_reduction <maximumf>, %3, %cst_5 [1] : vector<64x8xf32> to vector<64xf32>
    %6 = vector.shape_cast %5 : vector<64xf32> to vector<64x1xf32>
    %7 = vector.broadcast %6 : vector<64x1xf32> to vector<64x8xf32>
    %8 = arith.subf %3, %7 : vector<64x8xf32>
    %9 = math.exp %8 : vector<64x8xf32>
    %cst_6 = arith.constant dense<0.000000e+00> : vector<64xf32>
    %10 = vector.multi_reduction <add>, %9, %cst_6 [1] : vector<64x8xf32> to vector<64xf32>
    %11 = vector.shape_cast %10 : vector<64xf32> to vector<64x1xf32>
    %12 = vector.broadcast %11 : vector<64x1xf32> to vector<64x8xf32>
    %13 = arith.divf %9, %12 : vector<64x8xf32>
    %c0_7 = arith.constant 0 : index
    %c0_8 = arith.constant 0 : index
    %14 = vector.load %arg4[%c0_7, %c0_8] : memref<64x8xf32, #tpu.memory_space<vmem>>, vector<64x8xf32>
    tpu.vector_store %arg4[%c0_7, %c0_8], %13 {strides = array<i32>} : memref<64x8xf32, #tpu.memory_space<vmem>>, vector<64x8xf32>,
    %15 = tpu.iota {dimensions = array<i32: 1>} : vector<64x8xi32>
    %16 = tpu.bitcast %3 : vector<64x8xf32> -> vector<64x8xi32>
    %c0_i32 = arith.constant 0 : i32
    %17 = vector.broadcast %c0_i32 : i32 to vector<64x8xi32>
    %18 = arith.cmpi slt, %16, %17 : vector<64x8xi32>
    %c2147483647_i32 = arith.constant 2147483647 : i32
    %19 = vector.broadcast %c2147483647_i32 : i32 to vector<64x8xi32>
    %20 = arith.xori %16, %19 : vector<64x8xi32>
    %21 = arith.select %18, %20, %16 : vector<64x8xi1>, vector<64x8xi32>
    %c-8_i32 = arith.constant -8 : i32
    %22 = vector.broadcast %c-8_i32 : i32 to vector<64x8xi32>
    %23 = arith.andi %21, %22 : vector<64x8xi32>
    %c7_i32 = arith.constant 7 : i32
    %24 = vector.broadcast %c7_i32 : i32 to vector<64x8xi32>
    %25 = arith.subi %24, %15 : vector<64x8xi32>
    %26 = arith.ori %23, %25 : vector<64x8xi32>
    %cst_9 = arith.constant dense<-2147483648> : vector<64xi32>
    %27 = vector.multi_reduction <maxsi>, %26, %cst_9 [1] : vector<64x8xi32> to vector<64xi32>
    %28 = vector.shape_cast %27 : vector<64xi32> to vector<64x1xi32>
    %c7_i32_10 = arith.constant 7 : i32
    %29 = vector.broadcast %c7_i32_10 : i32 to vector<64x1xi32>
    %30 = arith.andi %28, %29 : vector<64x1xi32>
    %c7_i32_11 = arith.constant 7 : i32
    %31 = vector.broadcast %c7_i32_11 : i32 to vector<64x1xi32>
    %32 = arith.subi %31, %30 : vector<64x1xi32>
    %c0_12 = arith.constant 0 : index
    %c0_13 = arith.constant 0 : index
    %33 = vector.load %arg5[%c0_12, %c0_13] : memref<64x2xi32, #tpu.memory_space<vmem>>, vector<64x1xi32>
    tpu.vector_store %arg5[%c0_12, %c0_13], %32 {strides = array<i32>} : memref<64x2xi32, #tpu.memory_space<vmem>>, vector<64x1xi32>,
    %34 = vector.broadcast %32 : vector<64x1xi32> to vector<64x8xi32>
    %35 = arith.cmpi eq, %15, %34 : vector<64x8xi32>
    %c-2147483648_i32 = arith.constant -2147483648 : i32
    %36 = vector.broadcast %c-2147483648_i32 : i32 to vector<64x8xi32>
    %37 = arith.select %35, %36, %26 : vector<64x8xi1>, vector<64x8xi32>
    %cst_14 = arith.constant dense<-2147483648> : vector<64xi32>
    %38 = vector.multi_reduction <maxsi>, %37, %cst_14 [1] : vector<64x8xi32> to vector<64xi32>
    %39 = vector.shape_cast %38 : vector<64xi32> to vector<64x1xi32>
    %c7_i32_15 = arith.constant 7 : i32
    %40 = vector.broadcast %c7_i32_15 : i32 to vector<64x1xi32>
    %41 = arith.andi %39, %40 : vector<64x1xi32>
    %c7_i32_16 = arith.constant 7 : i32
    %42 = vector.broadcast %c7_i32_16 : i32 to vector<64x1xi32>
    %43 = arith.subi %42, %41 : vector<64x1xi32>
    %c0_17 = arith.constant 0 : index
    %c1 = arith.constant 1 : index
    %44 = vector.load %arg5[%c0_17, %c1] : memref<64x2xi32, #tpu.memory_space<vmem>>, vector<64x1xi32>
    tpu.vector_store %arg5[%c0_17, %c1], %43 {strides = array<i32>} : memref<64x2xi32, #tpu.memory_space<vmem>>, vector<64x1xi32>,
    return
  }
  func.func @transform_0(%arg0: i32) -> (i32, i32) {
    %c0_i32 = arith.constant 0 : i32
    %c0_i32_0 = arith.constant 0 : i32
    return %arg0, %c0_i32 : i32, i32
  }
  func.func @transform_1(%arg0: i32) -> (i32, i32) {
    %c0_i32 = arith.constant 0 : i32
    %c0_i32_0 = arith.constant 0 : i32
    %c0_i32_1 = arith.constant 0 : i32
    return %c0_i32, %c0_i32_0 : i32, i32
  }
  func.func @transform_2(%arg0: i32) -> (i32, i32) {
    %c0_i32 = arith.constant 0 : i32
    %c0_i32_0 = arith.constant 0 : i32
    return %arg0, %c0_i32 : i32, i32
  }
  func.func @transform_3(%arg0: i32) -> (i32, i32) {
    %c0_i32 = arith.constant 0 : i32
    %c0_i32_0 = arith.constant 0 : i32
    return %arg0, %c0_i32 : i32, i32
  }
  func.func @transform_4(%arg0: i32) -> (i32, i32) {
    %c0_i32 = arith.constant 0 : i32
    %c0_i32_0 = arith.constant 0 : i32
    return %arg0, %c0_i32 : i32, i32
  }
}

</mosaic_0001>

<bundles_post_ra>
// kernel: tpu_custom_call.1
= control target key start
LH: loop header
LB: loop body
LE: loop exit
PB: predicated region body
PF: predicated region fallthrough
CT: control target
= control target key end

     0   :  { %s1096_s15 = smov 0   ;;  %s1512_s0 = inlined_call_operand.vmem [shape: f32[128,32], index: 0, kind: input, shape index: {}]   ;;  %s1513_s1 = inlined_call_operand.vmem [shape: f32[32,128], index: 1, kind: input, shape index: {}]   ;;  %s1514_s2 = inlined_call_operand.vmem [shape: f32[128,8], index: 2, kind: output, shape index: {0}]   ;;  %s1515_s3 = inlined_call_operand.vmem [shape: f32[128,8], index: 3, kind: output, shape index: {1}]   ;;  %s1516_s4 = inlined_call_operand.vmem [shape: s32[128,2], index: 4, kind: output, shape index: {2}]  }
   0x1 LB: > { %s956_s16 = sadd.s32 4294967295, %s1069_s15   ;;  %p960_p0 = scmp.ge.s32.totalorder %s1069_s15, 1  ;;  %s1069_s15 = sphi %s1096_s15, %s15_s15  }
   0x2   : > { %p168_p1 = scmp.lt.s32.totalorder %s1069_s15, 3 }
   0x4   : > { %p169_p2 = pnand %p960_p0, %p168_p1 }
   0x5   : > { %v236_v0 = vld [vmem:[%s1513_s1] sm:$0xff] (!%p169_p2)  ;;  %v237_v1 = vld [vmem:[%s1513_s1 + $0x8] sm:$0xff] (!%p169_p2)  ;;  %v238_v2 = vld [vmem:[%s1513_s1 + $0x10] sm:$0xff] (!%p169_p2)  ;;  %s961_s23 = sshll.u32 (!%p169_p2), %s956_s16, 3  ;;  %vm240_vm0 = vcmask (!%p169_p2), 261120   ;;  %v475_v14 = vlaneseq (!%p169_p2)  ;;  %vm370_vm1 = vcmask (!%p169_p2), 64512  }
   0x6   : > { %172 = sbr.rel (%p169_p2) target bundleno = 859 (0x35b), region = 28  ;;  %v1011_v3 = vpack.c.bf16 (!%p169_p2), %v237_v1, %v236_v0  ;;  %v239_v4 = vld [vmem:[%s1513_s1 + $0x18] sm:$0xff] (!%p169_p2)  ;;  %p205_p3 = scmp.lt.s32.totalorder (!%p169_p2), %s961_s23, 15 }
   0x7   : > { %v1015_v5 = vpack.c.bf16 (!%p169_p2), %v239_v4, %v238_v2  ;;  %v1136_v15 = vand.u32 (!%p169_p2), 127, %v475_v14 }
   0x8   : > { %1012 = vmatprep.subr.bf16.mxu0 (!%p169_p2), %v1011_v3  ;;  %1019 = vmatprep.subr.bf16.mxu1 (!%p169_p2), %v1011_v3 }
   0x9   : > { %1014 = vmatpush3.bf16.msra.mxu0 (!%p169_p2), %v1011_v3  ;;  %1021 = vmatpush3.bf16.msra.mxu1 (!%p169_p2), %v1011_v3  ;;  %v517_v24 = vsub.s32 (!%p169_p2), 7, %v1136_v15 }
   0xa   : > { %1016 = vmatprep.subr.bf16.mxu0 (!%p169_p2), %v1015_v5  ;;  %1020 = vmatprep.subr.bf16.mxu1 (!%p169_p2), %v1015_v5 }
   0xd   : > { %s1518_s23 = smov (!%p205_p3, %s961_s23), 15  ;;  %1018 = vmatpush3.bf16.msra.mxu0 %v1015_v5  ;;  %1022 = vmatpush3.bf16.msra.mxu1 %v1015_v5 }
   0xe   : > { %s1116_s26 = sshll.u32 %s1518_s23, 3 }
   0xf   : > { %s208_s29 = scalar_lea.vmem %s1512_s0, %s1116_s26  ;;  %s1134_s6 = scalar_lea.vmem %s1514_s2, %s1116_s26 }
  0x10   : > { %v228_v6 = vld [vmem:[%s208_s29] sm:$0xff]  ;;  %v229_v8 = vld [vmem:[%s208_s29 + $0x8] sm:$0xff]  ;;  %v230_v10 = vld [vmem:[%s208_s29 + $0x10] sm:$0xff]  ;;  %s1292_s9 = scalar_lea.vmem %s1516_s4, %s1116_s26  ;;  %s220_s12 = scalar_lea.vmem %s1515_s3, %s1116_s26 }
  0x11   : > { %v232_v7 = vld [vmem:[%s208_s29 + $0x20] sm:$0xff]  ;;  %v233_v9 = vld [vmem:[%s208_s29 + $0x28] sm:$0xff]  ;;  %999 = vmatprep.mubr.msk.f32.mxu0 %vm240_vm0, %v228_v6  ;;  %v234_v11 = vld [vmem:[%s208_s29 + $0x30] sm:$0xff] }
  0x12   : > { %1005 = vmatprep.mubr.msk.f32.mxu1 %vm240_vm0, %v232_v7  ;;  %1000 = vmatmul.mubr.msk.f32.vlgmr.msra.gmra.mrb[0].mxu0 %vm240_vm0, %v229_v8  ;;  %v231_v12 = vld [vmem:[%s208_s29 + $0x18] sm:$0xff] }
  0x13   : > { %1006 = vmatmul.mubr.msk.f32.vlgmr.msra.gmra.mrb[0].mxu1 %vm240_vm0, %v233_v9  ;;  %1002 = vmatprep.mubr.msk.f32.mxu0 %vm240_vm0, %v230_v10  ;;  %v235_v13 = vld [vmem:[%s208_s29 + $0x38] sm:$0xff] }
  0x14   : > { %1008 = vmatprep.mubr.msk.f32.mxu1 %vm240_vm0, %v234_v11 }
  0x16   : > { %1003 = vmatmul.mubr.msk.f32.gmra.mrb[2].mxu0 %vm240_vm0, %v231_v12 }
  0x17   : > { %1009 = vmatmul.mubr.msk.f32.gmra.mrb[2].mxu1 %vm240_vm0, %v235_v13 }
  0xe5   : > { %v1138_v16 = vpop.f32.mrb[0].mxu0 }
  0xe6   : > { %v1140_v17 = vpop.f32.mrb[0].mxu1  ;;  %372 = vst.msk [vmem:[%s1134_s6 + $0x8] sm:$0xff] %vm370_vm1, %v1138_v16  ;;  %v1148_v18 = vpop.f32.mrb[1].mxu0  ;;  %vm486_vm3 = vcmp.lt.s32.totalorder %v1138_v16, 0  ;;  %v494_v21 = vxor.u32 2147483647, %v1138_v16 }
  0xe7   : > { %376 = vst.msk [vmem:[%s1134_s6 + $0x28] sm:$0xff] %vm370_vm1, %v1140_v17  ;;  %v1150_v19 = vpop.f32.mrb[1].mxu1  ;;  %vm490_vm2 = vcmp.lt.s32.totalorder %v1140_v17, 0  ;;  %v498_v20 = vxor.u32 2147483647, %v1140_v17  ;;  %371 = vst.msk [vmem:[%s1134_s6] sm:$0xff] %vm370_vm1, %v1148_v18 }
  0xe8   : > { %375 = vst.msk [vmem:[%s1134_s6 + $0x20] sm:$0xff] %vm370_vm1, %v1150_v19  ;;  %vm485_vm4 = vcmp.lt.s32.totalorder %v1148_v18, 0  ;;  %v493_v22 = vxor.u32 2147483647, %v1148_v18  ;;  %vm489_vm5 = vcmp.lt.s32.totalorder %v1150_v19, 0  ;;  %v502_v29 = vsel %vm486_vm3, %v494_v21, %v1138_v16 }
  0xe9   : > { %v506_v23 = vsel %vm490_vm2, %v498_v20, %v1140_v17  ;;  %v497_v25 = vxor.u32 2147483647, %v1150_v19  ;;  %v1168_v26 = vpop.f32.mrb[2].mxu0  ;;  %v510_v33 = vand.u32 4294967288, %v502_v29  ;;  %vm662_vm3 = vcmask 7168  }
  0xea   : > { %v1170_v27 = vpop.f32.mrb[2].mxu1  ;;  %v514_v28 = vand.u32 4294967288, %v506_v23  ;;  %v501_v30 = vsel %vm485_vm4, %v493_v22, %v1148_v18  ;;  %374 = vst.msk [vmem:[%s1134_s6 + $0x18] sm:$0xff] %vm370_vm1, %v1168_v26  ;;  %v1177_v31 = vpop.f32.mrb[3].mxu0  ;;  %vm488_vm6 = vcmp.lt.s32.totalorder %v1168_v26, 0 }
  0xeb   : > { %378 = vst.msk [vmem:[%s1134_s6 + $0x38] sm:$0xff] %vm370_vm1, %v1170_v27  ;;  %v1182_v32 = vpop.f32.mrb[3].mxu1  ;;  %v509_v34 = vand.u32 4294967288, %v501_v30  ;;  %v505_v35 = vsel %vm489_vm5, %v497_v25, %v1150_v19  ;;  %373 = vst.msk [vmem:[%s1134_s6 + $0x10] sm:$0xff] %vm370_vm1, %v1177_v31  ;;  %vm487_vm7 = vcmp.lt.s32.totalorder %v1177_v31, 0  ;;  %v1200_v39 = vor.u32 %v517_v24, %v510_v33 }
  0xec   : > { %v495_v36 = vxor.u32 2147483647, %v1177_v31  ;;  %377 = vst.msk [vmem:[%s1134_s6 + $0x30] sm:$0xff] %vm370_vm1, %v1182_v32  ;;  %vm491_vm8 = vcmp.lt.s32.totalorder %v1182_v32, 0  ;;  %v499_v37 = vxor.u32 2147483647, %v1182_v32  ;;  %v1198_v38 = vor.u32 %v517_v24, %v514_v28 }
  0xed   : > { %v1202_v40 = vor.u32 %v517_v24, %v509_v34  ;;  %v496_v41 = vxor.u32 2147483647, %v1168_v26  ;;  %v513_v42 = vand.u32 4294967288, %v505_v35  ;;  %v541_v46 = vsel %vm370_vm1, %v1200_v39, 2147483648 }
  0xee   : > { %v503_v43 = vsel %vm487_vm7, %v495_v36, %v1177_v31  ;;  %v507_v44 = vsel %vm491_vm8, %v499_v37, %v1182_v32  ;;  %v601_v45 = vsel %vm370_vm1, %v1198_v38, 2147483648  ;;  %v543_v50 = vshra.s32 %v541_v46, 16 }
  0xef   : > { %v526_v47 = vsel %vm370_vm1, %v1202_v40, 2147483648  ;;  %v504_v48 = vsel %vm488_vm6, %v496_v41, %v1168_v26  ;;  %v603_v49 = vshra.s32 %v601_v45, 16  ;;  %vm492_vm9 = vcmp.lt.s32.totalorder %v1170_v27, 0 }
  0xf0   : > { %v512_v51 = vand.u32 4294967288, %v504_v48  ;;  %v1217_v52 = vor.u32 %v517_v24, %v513_v42  ;;  %v511_v53 = vand.u32 4294967288, %v503_v43  ;;  %v515_v54 = vand.u32 4294967288, %v507_v44 }
  0xf1   : > { %v500_v55 = vxor.u32 2147483647, %v1170_v27  ;;  %v605_v56 = vcvt.s32.f32 %v603_v49  ;;  %v545_v57 = vcvt.s32.f32 %v543_v50  ;;  %v528_v58 = vshra.s32 %v526_v47, 16 }
  0xf2   : > { %v1220_v59 = vor.u32 %v517_v24, %v512_v51  ;;  %v586_v60 = vsel %vm370_vm1, %v1217_v52, 2147483648  ;;  %v1224_v61 = vor.u32 %v517_v24, %v511_v53  ;;  %v1226_v62 = vor.u32 %v517_v24, %v515_v54 }
  0xf3   : > { %v508_v63 = vsel %vm492_vm9, %v500_v55, %v1170_v27  ;;  %606 = vmax.xlane.f32.xlu1 %v605_v56  ;;  %546 = vmax.xlane.f32.xlu0 %v545_v57  ;;  %v530_v5 = vcvt.s32.f32 %v528_v58  ;;  %v588_v6 = vshra.s32 %v586_v60, 16  ;;  %v542_v22 = vand.u32 65535, %v541_v46 }
  0xf4   : > { %v571_v0 = vsel %vm370_vm1, %v1220_v59, 2147483648  ;;  %v516_v1 = vand.u32 4294967288, %v508_v63  ;;  %v556_v3 = vsel %vm370_vm1, %v1224_v61, 2147483648  ;;  %v1235_v4 = vsel %vm370_vm1, %v1226_v62, 2147483648 }
  0xf5   : > { %v573_v2 = vshra.s32 %v571_v0, 16  ;;  %v558_v9 = vshra.s32 %v556_v3, 16  ;;  %v618_v10 = vshra.s32 %v1235_v4, 16  ;;  %v590_v13 = vcvt.s32.f32 %v588_v6 }
  0xf6   : > { %v1237_v7 = vor.u32 %v517_v24, %v516_v1  ;;  %v544_v25 = vcvt.s32.f32 %v542_v22  ;;  %v527_v28 = vand.u32 65535, %v526_v47  ;;  %v602_v29 = vand.u32 65535, %v601_v45 }
  0xf7   : > { %v575_v8 = vcvt.s32.f32 %v573_v2  ;;  %531 = vmax.xlane.f32.xlu0 %v530_v5  ;;  %v560_v14 = vcvt.s32.f32 %v558_v9  ;;  %v620_v20 = vcvt.s32.f32 %v618_v10  ;;  %v587_v36 = vand.u32 65535, %v586_v60 }
  0xf8   : > { %v631_v11 = vsel %vm370_vm1, %v1237_v7, 2147483648  ;;  %v529_v34 = vcvt.s32.f32 %v527_v28  ;;  %v604_v35 = vcvt.s32.f32 %v602_v29  ;;  %v572_v37 = vand.u32 65535, %v571_v0 }
  0xf9   : > { %576 = vmax.xlane.f32.xlu1 %v575_v8  ;;  %v633_v12 = vshra.s32 %v631_v11, 16  ;;  %v589_v45 = vcvt.s32.f32 %v587_v36  ;;  %v557_v47 = vand.u32 65535, %v556_v3  ;;  %v632_v49 = vand.u32 65535, %v631_v11 }
  0xfa   : > { %v574_v46 = vcvt.s32.f32 %v572_v37  ;;  %v617_v55 = vand.u32 65535, %v1235_v4  ;;  %v382_v1 = vsel %vm370_vm1, %v1138_v16, -inf  ;;  %v379_v2 = vsel %vm370_vm1, %v1148_v18, -inf }
  0xfb   : > { %591 = vmax.xlane.f32.xlu0 %v590_v13  ;;  %v635_v21 = vcvt.s32.f32 %v633_v12  ;;  %v559_v54 = vcvt.s32.f32 %v557_v47  ;;  %v388_v3 = vsel %vm370_vm1, %v1168_v26, -inf  ;;  %v385_v4 = vsel %vm370_vm1, %v1177_v31, -inf }
  0xfc   : > { %v619_v63 = vcvt.s32.f32 %v617_v55  ;;  %v391_v6 = vsel %vm370_vm1, %v1150_v19, -inf  ;;  %v397_v9 = vsel %vm370_vm1, %v1182_v32, -inf }
  0xfd   : > { %561 = vmax.xlane.f32.xlu1 %v560_v14 }
  0xff   : > { %621 = vmax.xlane.f32.xlu0 %v620_v20 }
 0x101   : > { %636 = vmax.xlane.f32.xlu1 %v635_v21 }
 0x180   : > { %v1242_v23 = vpop.xlane.xlu1 %606  ;;  %v1244_v24 = vpop.xlane.xlu0 %546 }
 0x181   : > { %vm548_vm10 = vcmp.eq.f32.partialorder %v545_v57, %v1244_v24  ;;  %vm608_vm11 = vcmp.eq.f32.partialorder %v605_v56, %v1242_v23  ;;  %v634_v57 = vcvt.s32.f32 %v632_v49  ;;  %v553_v10 = vcvt.f32.s32 %v1244_v24 }
 0x182   : > { %v549_v30 = vsel %vm548_vm10, %v544_v25, -inf  ;;  %v609_v43 = vsel %vm608_vm11, %v604_v35, -inf  ;;  %v613_v11 = vcvt.f32.s32 %v1242_v23 }
 0x183   : > { %550 = vmax.xlane.f32.xlu1 %v549_v30 }
 0x184   : > { %v1248_v33 = vpop.xlane.xlu0 %531  ;;  %v614_v25 = vshll.u32 %v613_v11, 16 }
 0x185   : > { %vm533_vm12 = vcmp.eq.f32.partialorder %v530_v5, %v1248_v33  ;;  %v394_v5 = vsel %vm370_vm1, %v1140_v17, -inf }
 0x186   : > { %v1250_v41 = vpop.xlane.xlu1 %576  ;;  %v534_v42 = vsel %vm533_vm12, %v529_v34, -inf }
 0x187   : > { %535 = vmax.xlane.f32.xlu0 %v534_v42  ;;  %610 = vmax.xlane.f32.xlu1 %v609_v43  ;;  %vm578_vm13 = vcmp.eq.f32.partialorder %v575_v8, %v1250_v41  ;;  %v400_v8 = vsel %vm370_vm1, %v1170_v27, -inf }
 0x188   : > { %v1254_v44 = vpop.xlane.xlu0 %591  ;;  %v579_v51 = vsel %vm578_vm13, %v574_v46, -inf }
 0x189   : > { %vm593_vm14 = vcmp.eq.f32.partialorder %v590_v13, %v1254_v44  ;;  %v554_v13 = vshll.u32 %v553_v10, 16  ;;  %v598_v28 = vcvt.f32.s32 %v1254_v44 }
 0x18a   : > { %v1256_v48 = vpop.xlane.xlu1 %561  ;;  %v594_v50 = vsel %vm593_vm14, %v589_v45, -inf }
 0x18b   : > { %595 = vmax.xlane.f32.xlu0 %v594_v50  ;;  %580 = vmax.xlane.f32.xlu1 %v579_v51  ;;  %vm563_vm15 = vcmp.eq.f32.partialorder %v560_v14, %v1256_v48  ;;  %v538_v14 = vcvt.f32.s32 %v1248_v33  ;;  %v599_v42 = vshll.u32 %v598_v28, 16  ;;  %v568_v43 = vcvt.f32.s32 %v1256_v48 }
 0x18c   : > { %v1260_v53 = vpop.xlane.xlu0 %621  ;;  %v564_v58 = vsel %vm563_vm15, %v559_v54, -inf }
 0x18d   : > { %vm623_vm2 = vcmp.eq.f32.partialorder %v620_v20, %v1260_v53  ;;  %v539_v34 = vshll.u32 %v538_v14, 16  ;;  %v628_v44 = vcvt.f32.s32 %v1260_v53 }
 0x18e   : > { %v1263_v56 = vpop.xlane.xlu1 %636  ;;  %v624_v0 = vsel %vm623_vm2, %v619_v63, -inf }
 0x18f   : > { %vm638_vm0 = vcmp.eq.f32.partialorder %v635_v21, %v1263_v56  ;;  %565 = vmax.xlane.f32.xlu0 %v564_v58  ;;  %v583_v21 = vcvt.f32.s32 %v1250_v41  ;;  %v643_v45 = vcvt.f32.s32 %v1263_v56  ;;  %v629_v53 = vshll.u32 %v628_v44, 16 }
 0x190   : > { %v639_v60 = vsel %vm638_vm0, %v634_v57, -inf }
 0x191   : > { %640 = vmax.xlane.f32.xlu1 %v639_v60  ;;  %v584_v23 = vshll.u32 %v583_v21, 16  ;;  %v569_v60 = vshll.u32 %v568_v43, 16  ;;  %v644_v63 = vshll.u32 %v643_v45, 16 }
 0x193   : > { %625 = vmax.xlane.f32.xlu0 %v624_v0 }
 0x195   : > { %383 = vmax.xlane.f32.xlu1 %v382_v1 }
 0x197   : > { %380 = vmax.xlane.f32.xlu0 %v379_v2 }
 0x199   : > { %389 = vmax.xlane.f32.xlu1 %v388_v3 }
 0x19b   : > { %386 = vmax.xlane.f32.xlu0 %v385_v4 }
 0x19d   : > { %395 = vmax.xlane.f32.xlu1 %v394_v5 }
 0x19f   : > { %392 = vmax.xlane.f32.xlu0 %v391_v6 }
 0x1a1   : > { %401 = vmax.xlane.f32.xlu1 %v400_v8 }
 0x1a3   : > { %398 = vmax.xlane.f32.xlu0 %v397_v9 }
 0x210   : > { %v551_v12 = vpop.xlane.xlu1 %550 }
 0x211   : > { %v552_v20 = vcvt.f32.s32 %v551_v12 }
 0x213   : > { %v555_v22 = vadd.s32 %v554_v13, %v552_v20 }
 0x214   : > { %v536_v29 = vpop.xlane.xlu0 %535  ;;  %v611_v30 = vpop.xlane.xlu1 %610 }
 0x215   : > { %v647_v35 = vand.u32 7, %v555_v22  ;;  %v537_v36 = vcvt.f32.s32 %v536_v29  ;;  %v612_v24 = vcvt.f32.s32 %v611_v30 }
 0x217   : > { %v655_v33 = vsub.s32 7, %v647_v35  ;;  %v540_v37 = vadd.s32 %v539_v34, %v537_v36  ;;  %v615_v41 = vadd.s32 %v614_v25, %v612_v24 }
 0x218   : > { %v596_v46 = vpop.xlane.xlu0 %595  ;;  %v581_v47 = vpop.xlane.xlu1 %580 }
 0x219   : > { %664 = vst.msk [vmem:[%s1292_s9 + $0x8] sm:$0xff] %vm662_vm3, %v655_v33  ;;  %v646_v49 = vand.u32 7, %v540_v37  ;;  %v651_v50 = vand.u32 7, %v615_v41  ;;  %v597_v51 = vcvt.f32.s32 %v596_v46  ;;  %v582_v54 = vcvt.f32.s32 %v581_v47 }
 0x21a   : > { %vm672_vm4 = vcmp.eq.s32.totalorder %v1136_v15, %v655_v33 }
 0x21b   : > { %v654_v55 = vsub.s32 7, %v646_v49  ;;  %v659_v57 = vsub.s32 7, %v651_v50  ;;  %v600_v58 = vadd.s32 %v599_v42, %v597_v51  ;;  %v585_v48 = vadd.s32 %v584_v23, %v582_v54 }
 0x21c   : > { %v566_v56 = vpop.xlane.xlu0 %565  ;;  %v680_v0 = vsel %vm672_vm4, 2147483648, %v1200_v39 }
 0x21d   : > { %663 = vst.msk [vmem:[%s1292_s9] sm:$0xff] %vm662_vm3, %v654_v55  ;;  %668 = vst.msk [vmem:[%s1292_s9 + $0x28] sm:$0xff] %vm662_vm3, %v659_v57  ;;  %v650_v1 = vand.u32 7, %v600_v58  ;;  %v649_v2 = vand.u32 7, %v585_v48  ;;  %v567_v4 = vcvt.f32.s32 %v566_v56  ;;  %v1306_v5 = vsel %vm370_vm1, %v680_v0, 2147483648 }
 0x21e   : > { %v641_v3 = vpop.xlane.xlu1 %640  ;;  %v704_v8 = vshra.s32 %v1306_v5, 16  ;;  %vm676_vm5 = vcmp.eq.s32.totalorder %v1136_v15, %v659_v57  ;;  %vm671_vm6 = vcmp.eq.s32.totalorder %v1136_v15, %v654_v55 }
 0x21f   : > { %v642_v6 = vcvt.f32.s32 %v641_v3  ;;  %v658_v39 = vsub.s32 7, %v650_v1  ;;  %v657_v9 = vsub.s32 7, %v649_v2  ;;  %v570_v10 = vadd.s32 %v569_v60, %v567_v4 }
 0x220   : > { %v684_v11 = vsel %vm676_vm5, 2147483648, %v1198_v38  ;;  %v1312_v13 = vcvt.s32.f32 %v704_v8  ;;  %v626_v14 = vpop.xlane.xlu0 %625  ;;  %v679_v21 = vsel %vm671_vm6, 2147483648, %v1202_v40 }
 0x221   : > { %v645_v12 = vadd.s32 %v644_v63, %v642_v6  ;;  %v1315_v20 = vsel %vm370_vm1, %v684_v11, 2147483648  ;;  %667 = vst.msk [vmem:[%s1292_s9 + $0x20] sm:$0xff] %vm662_vm3, %v658_v39  ;;  %666 = vst.msk [vmem:[%s1292_s9 + $0x18] sm:$0xff] %vm662_vm3, %v657_v9  ;;  %v648_v22 = vand.u32 7, %v570_v10  ;;  %v627_v28 = vcvt.f32.s32 %v626_v14 }
 0x222   : > { %v384_v25 = vpop.xlane.xlu1 %383  ;;  %v764_v29 = vshra.s32 %v1315_v20, 16  ;;  %v1324_v38 = vsel %vm370_vm1, %v679_v21, 2147483648  ;;  %707 = vmax.xlane.f32.xlu1 %v1312_v13  ;;  %vm674_vm7 = vcmp.eq.s32.totalorder %v1136_v15, %v657_v9  ;;  %vm675_vm8 = vcmp.eq.s32.totalorder %v1136_v15, %v658_v39 }
 0x223   : > { %v653_v30 = vand.u32 7, %v645_v12  ;;  %v404_v34 = vsub.f32 %v1138_v16, %v384_v25  ;;  %v689_v40 = vshra.s32 %v1324_v38, 16  ;;  %v656_v35 = vsub.s32 7, %v648_v22 }
 0x224   : > { %v630_v36 = vadd.s32 %v629_v53, %v627_v28  ;;  %v1330_v24 = vcvt.s32.f32 %v764_v29  ;;  %v682_v23 = vsel %vm674_vm7, 2147483648, %v1220_v59  ;;  %v381_v41 = vpop.xlane.xlu0 %380  ;;  %v683_v47 = vsel %vm675_vm8, 2147483648, %v1217_v52 }
 0x225   : > { %v661_v33 = vsub.s32 7, %v653_v30  ;;  %v413_v37 = vmul.f32 1.442695, %v404_v34  ;;  %v1333_v42 = vcvt.s32.f32 %v689_v40  ;;  %v1336_v43 = vsel %vm370_vm1, %v682_v23, 2147483648  ;;  %665 = vst.msk [vmem:[%s1292_s9 + $0x10] sm:$0xff] %vm662_vm3, %v656_v35 }
 0x226   : > { %v652_v16 = vand.u32 7, %v630_v36  ;;  %v390_v44 = vpop.xlane.xlu1 %389  ;;  %v403_v45 = vsub.f32 %v1148_v18, %v381_v41  ;;  %v734_v46 = vshra.s32 %v1336_v43, 16  ;;  %767 = vmax.xlane.f32.xlu1 %v1330_v24  ;;  %v1353_v51 = vsel %vm370_vm1, %v683_v47, 2147483648 }
 0x227   : > { %670 = vst.msk [vmem:[%s1292_s9 + $0x38] sm:$0xff] %vm662_vm3, %v661_v33  ;;  %1031 = vpow2.f32 %v413_v37  ;;  %v406_v59 = vsub.f32 %v1168_v26, %v390_v44  ;;  %692 = vmax.xlane.f32.xlu0 %v1333_v42  ;;  %vm678_vm9 = vcmp.eq.s32.totalorder %v1136_v15, %v661_v33  ;;  %v749_v55 = vshra.s32 %v1353_v51, 16 }
 0x228   : > { %v660_v49 = vsub.s32 7, %v652_v16  ;;  %v411_v18 = vmul.f32 1.442695, %v403_v45  ;;  %v1350_v50 = vcvt.s32.f32 %v734_v46  ;;  %v387_v57 = vpop.xlane.xlu0 %386  ;;  %v686_v58 = vsel %vm678_vm9, 2147483648, %v1237_v7 }
 0x229   : > { %v417_v54 = vmul.f32 1.442695, %v406_v59  ;;  %vm673_vm10 = vcmp.eq.s32.totalorder %v1136_v15, %v656_v35  ;;  %v405_v52 = vsub.f32 %v1177_v31, %v387_v57  ;;  %v1362_v48 = vsel %vm370_vm1, %v686_v58, 2147483648 }
 0x22a   : > { %669 = vst.msk [vmem:[%s1292_s9 + $0x30] sm:$0xff] %vm662_vm3, %v660_v49  ;;  %1033 = vpow2.f32 %v411_v18  ;;  %v396_v26 = vpop.xlane.xlu1 %395  ;;  %v681_v60 = vsel %vm673_vm10, 2147483648, %v1224_v61  ;;  %737 = vmax.xlane.f32.xlu1 %v1350_v50  ;;  %v1367_v63 = vcvt.s32.f32 %v749_v55  ;;  %v794_v7 = vshra.s32 %v1362_v48, 16 }
 0x22b   : > { %1035 = vpow2.f32 %v417_v54  ;;  %v408_v53 = vsub.f32 %v1140_v17, %v396_v26  ;;  %v415_v56 = vmul.f32 1.442695, %v405_v52  ;;  %v1371_v0 = vsel %vm370_vm1, %v681_v60, 2147483648 }
 0x22c   : > { %vm677_vm11 = vcmp.eq.s32.totalorder %v1136_v15, %v660_v49  ;;  %752 = vmax.xlane.f32.xlu0 %v1367_v63  ;;  %v1375_v1 = vcvt.s32.f32 %v794_v7  ;;  %v719_v61 = vshra.s32 %v1371_v0, 16  ;;  %v393_v2 = vpop.xlane.xlu0 %392  ;;  %v703_v41 = vand.u32 65535, %v1306_v5 }
 0x22d   : > { %v421_v31 = vmul.f32 1.442695, %v408_v53  ;;  %v685_v17 = vsel %vm677_vm11, 2147483648, %v1226_v62  ;;  %1037 = vpow2.f32 %v415_v56  ;;  %v407_v4 = vsub.f32 %v1150_v19, %v393_v2 }
 0x22e   : > { %v402_v3 = vpop.xlane.xlu1 %401  ;;  %v1381_v6 = vsel %vm370_vm1, %v685_v17, 2147483648  ;;  %797 = vmax.xlane.f32.xlu1 %v1375_v1  ;;  %v1385_v8 = vcvt.s32.f32 %v719_v61  ;;  %v705_v44 = vcvt.s32.f32 %v703_v41  ;;  %v763_v45 = vand.u32 65535, %v1315_v20 }
 0x22f   : > { %1039 = vpow2.f32 %v421_v31  ;;  %v410_v15 = vsub.f32 %v1170_v27, %v402_v3  ;;  %v779_v39 = vshra.s32 %v1381_v6, 16  ;;  %v419_v9 = vmul.f32 1.442695, %v407_v4 }
 0x230   : > { %722 = vmax.xlane.f32.xlu0 %v1385_v8  ;;  %v399_v19 = vpop.xlane.xlu0 %398  ;;  %v688_v46 = vand.u32 65535, %v1324_v38  ;;  %v765_v18 = vcvt.s32.f32 %v763_v45  ;;  %v733_v5 = vand.u32 65535, %v1336_v43  ;;  %v793_v58 = vand.u32 65535, %v1362_v48 }
 0x231   : > { %v1388_v10 = vpop.eup %1031  ;;  %v425_v62 = vmul.f32 1.442695, %v410_v15  ;;  %v1391_v11 = vcvt.s32.f32 %v779_v39  ;;  %1041 = vpow2.f32 %v419_v9  ;;  %v409_v12 = vsub.f32 %v1182_v32, %v399_v19 }
 0x232   : > { %v430_v14 = vsel %vm370_vm1, %v1388_v10, 0.0  ;;  %v690_v54 = vcvt.s32.f32 %v688_v46  ;;  %v735_v57 = vcvt.s32.f32 %v733_v5  ;;  %v795_v60 = vcvt.s32.f32 %v793_v58 }
 0x233   : > { %1043 = vpow2.f32 %v425_v62  ;;  %431 = vadd.xlane.f32.xlu1 %v430_v14  ;;  %v423_v21 = vmul.f32 1.442695, %v409_v12  ;;  %v778_v7 = vand.u32 65535, %v1381_v6 }
 0x234   : > { %v1396_v27 = vpop.eup %1033  ;;  %782 = vmax.xlane.f32.xlu0 %v1391_v11 }
 0x235   : > { %v1398_v22 = vpop.eup %1035  ;;  %1045 = vpow2.f32 %v423_v21  ;;  %v427_v28 = vsel %vm370_vm1, %v1396_v27, 0.0  ;;  %v780_v31 = vcvt.s32.f32 %v778_v7 }
 0x236   : > { %v436_v25 = vsel %vm370_vm1, %v1398_v22, 0.0 }
 0x237   : > { %437 = vadd.xlane.f32.xlu1 %v436_v25  ;;  %v1405_v32 = vpop.eup %1037 }
 0x238   : > { %428 = vadd.xlane.f32.xlu0 %v427_v28  ;;  %v433_v34 = vsel %vm370_vm1, %v1405_v32, 0.0 }
 0x239   : > { %v1407_v29 = vpop.eup %1039 }
 0x23a   : > { %v442_v30 = vsel %vm370_vm1, %v1407_v29, 0.0 }
 0x23b   : > { %443 = vadd.xlane.f32.xlu1 %v442_v30  ;;  %v1413_v40 = vpop.eup %1041 }
 0x23c   : > { %434 = vadd.xlane.f32.xlu0 %v433_v34  ;;  %v439_v23 = vsel %vm370_vm1, %v1413_v40, 0.0 }
 0x23d   : > { %v1415_v35 = vpop.eup %1043 }
 0x23e   : > { %v448_v36 = vsel %vm370_vm1, %v1415_v35, 0.0 }
 0x23f   : > { %449 = vadd.xlane.f32.xlu1 %v448_v36  ;;  %v1421_v33 = vpop.eup %1045 }
 0x240   : > { %440 = vadd.xlane.f32.xlu0 %v439_v23  ;;  %v445_v37 = vsel %vm370_vm1, %v1421_v33, 0.0 }
 0x244   : > { %446 = vadd.xlane.f32.xlu0 %v445_v37 }
 0x2af   : > { %v1426_v16 = vpop.xlane.xlu1 %707 }
 0x2b0   : > { %vm709_vm12 = vcmp.eq.f32.partialorder %v1312_v13, %v1426_v16  ;;  %v748_v13 = vand.u32 65535, %v1353_v51  ;;  %v714_v34 = vcvt.f32.s32 %v1426_v16 }
 0x2b1   : > { %v710_v59 = vsel %vm709_vm12, %v705_v44, -inf }
 0x2b2   : > { %711 = vmax.xlane.f32.xlu1 %v710_v59  ;;  %v750_v26 = vcvt.s32.f32 %v748_v13  ;;  %v715_v23 = vshll.u32 %v714_v34, 16 }
 0x2b3   : > { %v1432_v47 = vpop.xlane.xlu1 %767 }
 0x2b4   : > { %v1434_v49 = vpop.xlane.xlu0 %692  ;;  %vm769_vm13 = vcmp.eq.f32.partialorder %v1330_v24, %v1432_v47 }
 0x2b5   : > { %vm694_vm14 = vcmp.eq.f32.partialorder %v1333_v42, %v1434_v49  ;;  %v770_v20 = vsel %vm769_vm13, %v765_v18, -inf  ;;  %v718_v42 = vand.u32 65535, %v1371_v0 }
 0x2b6   : > { %v695_v38 = vsel %vm694_vm14, %v690_v54, -inf  ;;  %771 = vmax.xlane.f32.xlu1 %v770_v20 }
 0x2b7   : > { %696 = vmax.xlane.f32.xlu0 %v695_v38  ;;  %v1442_v55 = vpop.xlane.xlu1 %737  ;;  %v720_v53 = vcvt.s32.f32 %v718_v42 }
 0x2b8   : > { %vm739_vm15 = vcmp.eq.f32.partialorder %v1350_v50, %v1442_v55 }
 0x2b9   : > { %v1447_v43 = vpop.xlane.xlu0 %752  ;;  %v740_v24 = vsel %vm739_vm15, %v735_v57, -inf }
 0x2ba   : > { %741 = vmax.xlane.f32.xlu1 %v740_v24  ;;  %vm754_vm0 = vcmp.eq.f32.partialorder %v1367_v63, %v1447_v43  ;;  %v759_v16 = vcvt.f32.s32 %v1447_v43 }
 0x2bb   : > { %v755_v51 = vsel %vm754_vm0, %v750_v26, -inf  ;;  %v1452_v52 = vpop.xlane.xlu1 %797 }
 0x2bc   : > { %756 = vmax.xlane.f32.xlu0 %v755_v51  ;;  %vm799_vm2 = vcmp.eq.f32.partialorder %v1375_v1, %v1452_v52  ;;  %v804_v13 = vcvt.f32.s32 %v1452_v52  ;;  %v760_v24 = vshll.u32 %v759_v16, 16 }
 0x2bd   : > { %v1456_v48 = vpop.xlane.xlu0 %722  ;;  %v800_v50 = vsel %vm799_vm2, %v795_v60, -inf }
 0x2be   : > { %801 = vmax.xlane.f32.xlu1 %v800_v50  ;;  %vm724_vm3 = vcmp.eq.f32.partialorder %v1385_v8, %v1456_v48  ;;  %v729_v26 = vcvt.f32.s32 %v1456_v48  ;;  %v805_v7 = vshll.u32 %v804_v13, 16 }
 0x2bf   : > { %v725_v56 = vsel %vm724_vm3, %v720_v53, -inf }
 0x2c0   : > { %v432_v63 = vpop.xlane.xlu1 %431  ;;  %726 = vmax.xlane.f32.xlu0 %v725_v56 }
 0x2c1   : > { %1047 = vrcp.f32 %v432_v63  ;;  %v1461_v0 = vpop.xlane.xlu0 %782 }
 0x2c2   : > { %vm784_vm4 = vcmp.eq.f32.partialorder %v1391_v11, %v1461_v0 }
 0x2c3   : > { %v785_v1 = vsel %vm784_vm4, %v780_v31, -inf  ;;  %v730_v31 = vshll.u32 %v729_v26, 16 }
 0x2c4   : > { %v438_v61 = vpop.xlane.xlu1 %437  ;;  %786 = vmax.xlane.f32.xlu0 %v785_v1  ;;  %v789_v1 = vcvt.f32.s32 %v1461_v0 }
 0x2c5   : > { %1049 = vrcp.f32 %v438_v61  ;;  %v429_v2 = vpop.xlane.xlu0 %428 }
 0x2c6   : > { %1051 = vrcp.f32 %v429_v2 }
 0x2c8   : > { %v444_v17 = vpop.xlane.xlu1 %443 }
 0x2c9   : > { %1053 = vrcp.f32 %v444_v17  ;;  %v435_v3 = vpop.xlane.xlu0 %434 }
 0x2ca   : > { %1055 = vrcp.f32 %v435_v3 }
 0x2cb   : > { %v1048_v4 = vpop.eup %1047 }
 0x2cc   : > { %v454_v6 = vmul.f32 %v1048_v4, %v1388_v10  ;;  %v450_v15 = vpop.xlane.xlu1 %449 }
 0x2cd   : > { %1057 = vrcp.f32 %v450_v15  ;;  %v441_v8 = vpop.xlane.xlu0 %440 }
 0x2ce   : > { %468 = vst.msk [vmem:[%s220_s12 + $0x8] sm:$0xff] %vm370_vm1, %v454_v6  ;;  %1059 = vrcp.f32 %v441_v8 }
 0x2cf   : > { %v1050_v39 = vpop.eup %1049 }
 0x2d0   : > { %v458_v9 = vmul.f32 %v1050_v39, %v1398_v22  ;;  %v1052_v62 = vpop.eup %1051  ;;  %v790_v39 = vshll.u32 %v789_v1, 16 }
 0x2d1   : > { %v452_v11 = vmul.f32 %v1052_v62, %v1396_v27  ;;  %v447_v19 = vpop.xlane.xlu0 %446 }
 0x2d2   : > { %470 = vst.msk [vmem:[%s220_s12 + $0x18] sm:$0xff] %vm370_vm1, %v458_v9  ;;  %1061 = vrcp.f32 %v447_v19 }
 0x2d3   : > { %v1054_v12 = vpop.eup %1053  ;;  %467 = vst.msk [vmem:[%s220_s12] sm:$0xff] %vm370_vm1, %v452_v11 }
 0x2d4   : > { %v462_v10 = vmul.f32 %v1054_v12, %v1407_v29  ;;  %v1056_v14 = vpop.eup %1055 }
 0x2d5   : > { %v456_v21 = vmul.f32 %v1056_v14, %v1405_v32  ;;  %v774_v32 = vcvt.f32.s32 %v1432_v47 }
 0x2d6   : > { %472 = vst.msk [vmem:[%s220_s12 + $0x28] sm:$0xff] %vm370_vm1, %v462_v10 }
 0x2d7   : > { %v1058_v25 = vpop.eup %1057  ;;  %469 = vst.msk [vmem:[%s220_s12 + $0x10] sm:$0xff] %vm370_vm1, %v456_v21  ;;  %v775_v44 = vshll.u32 %v774_v32, 16 }
 0x2d8   : > { %v466_v22 = vmul.f32 %v1058_v25, %v1415_v35  ;;  %v1060_v28 = vpop.eup %1059  ;;  %v699_v35 = vcvt.f32.s32 %v1434_v49 }
 0x2d9   : > { %v460_v27 = vmul.f32 %v1060_v28, %v1413_v40  ;;  %v744_v40 = vcvt.f32.s32 %v1442_v55 }
 0x2da   : > { %474 = vst.msk [vmem:[%s220_s12 + $0x38] sm:$0xff] %vm370_vm1, %v466_v22  ;;  %v700_v59 = vshll.u32 %v699_v35, 16 }
 0x2db   : > { %471 = vst.msk [vmem:[%s220_s12 + $0x20] sm:$0xff] %vm370_vm1, %v460_v27  ;;  %v745_v38 = vshll.u32 %v744_v40, 16 }
 0x2dc   : > { %v1062_v30 = vpop.eup %1061 }
 0x2dd   : > { %v464_v29 = vmul.f32 %v1062_v30, %v1421_v33 }
 0x2df   : > { %473 = vst.msk [vmem:[%s220_s12 + $0x30] sm:$0xff] %vm370_vm1, %v464_v29  ;;  %vm823_vm1 = vcmask 15368  }
 0x33f   : > { %v712_v36 = vpop.xlane.xlu1 %711 }
 0x340   : > { %v713_v37 = vcvt.f32.s32 %v712_v36 }
 0x342   : > { %v716_v41 = vadd.s32 %v715_v23, %v713_v37 }
 0x343   : > { %v772_v45 = vpop.xlane.xlu1 %771 }
 0x344   : > { %v697_v46 = vpop.xlane.xlu0 %696  ;;  %v808_v33 = vand.u32 7, %v716_v41  ;;  %v773_v18 = vcvt.f32.s32 %v772_v45 }
 0x345   : > { %v698_v54 = vcvt.f32.s32 %v697_v46 }
 0x346   : > { %v816_v47 = vsub.s32 7, %v808_v33  ;;  %v776_v5 = vadd.s32 %v775_v44, %v773_v18 }
 0x347   : > { %v701_v20 = vadd.s32 %v700_v59, %v698_v54  ;;  %v742_v49 = vpop.xlane.xlu1 %741 }
 0x348   : > { %825 = vst.msk [vmem:[%s1292_s9 + $0x8] sm:$0xff] %vm823_vm1, %v816_v47  ;;  %v812_v55 = vand.u32 7, %v776_v5  ;;  %v743_v58 = vcvt.f32.s32 %v742_v49 }
 0x349   : > { %v807_v57 = vand.u32 7, %v701_v20  ;;  %v757_v42 = vpop.xlane.xlu0 %756 }
 0x34a   : > { %v820_v43 = vsub.s32 7, %v812_v55  ;;  %v746_v60 = vadd.s32 %v745_v38, %v743_v58  ;;  %v758_v50 = vcvt.f32.s32 %v757_v42 }
 0x34b   : > { %v815_v51 = vsub.s32 7, %v807_v57  ;;  %v802_v53 = vpop.xlane.xlu1 %801 }
 0x34c   : > { %829 = vst.msk [vmem:[%s1292_s9 + $0x28] sm:$0xff] %vm823_vm1, %v820_v43  ;;  %v810_v52 = vand.u32 7, %v746_v60  ;;  %v761_v56 = vadd.s32 %v760_v24, %v758_v50  ;;  %v803_v63 = vcvt.f32.s32 %v802_v53 }
 0x34d   : > { %824 = vst.msk [vmem:[%s1292_s9] sm:$0xff] %vm823_vm1, %v815_v51  ;;  %v727_v48 = vpop.xlane.xlu0 %726 }
 0x34e   : > { %v818_v61 = vsub.s32 7, %v810_v52  ;;  %v811_v2 = vand.u32 7, %v761_v56  ;;  %v806_v17 = vadd.s32 %v805_v7, %v803_v63  ;;  %v728_v3 = vcvt.f32.s32 %v727_v48 }
 0x350   : > { %827 = vst.msk [vmem:[%s1292_s9 + $0x18] sm:$0xff] %vm823_vm1, %v818_v61  ;;  %v819_v4 = vsub.s32 7, %v811_v2  ;;  %v814_v6 = vand.u32 7, %v806_v17  ;;  %v731_v15 = vadd.s32 %v730_v31, %v728_v3 }
 0x351   : > { %v787_v8 = vpop.xlane.xlu0 %786 }
 0x352   : > { %828 = vst.msk [vmem:[%s1292_s9 + $0x20] sm:$0xff] %vm823_vm1, %v819_v4  ;;  %v822_v9 = vsub.s32 7, %v814_v6  ;;  %v809_v62 = vand.u32 7, %v731_v15  ;;  %v788_v0 = vcvt.f32.s32 %v787_v8 }
 0x354   : > { %831 = vst.msk [vmem:[%s1292_s9 + $0x38] sm:$0xff] %vm823_vm1, %v822_v9  ;;  %v817_v11 = vsub.s32 7, %v809_v62  ;;  %v791_v19 = vadd.s32 %v790_v39, %v788_v0 }
 0x356   : > { %826 = vst.msk [vmem:[%s1292_s9 + $0x10] sm:$0xff] %vm823_vm1, %v817_v11  ;;  %v813_v12 = vand.u32 7, %v791_v19 }
 0x358   : > { %v821_v10 = vsub.s32 7, %v813_v12 }
 0x35a   : > { %830 = vst.msk [vmem:[%s1292_s9 + $0x30] sm:$0xff] %vm823_vm1, %v821_v10 }
 0x35b PF: > { %s15_s15 = sadd.s32 1, %s1069_s15  }
 0x35c   : > { %p12_p4 = scmp.ge.s32.totalorder %s15_s15, 4  }
 0x35e   :  { %14 = sbr.rel (!%p12_p4) target bundleno = 1 (0x1), region = 82 }

</bundles_post_ra>
